<compile_context>
chip_gen: v7x
topology: tpu7x:2x2x1
jax: 0.10.0
libtpu: 0.0.40
codegen_flags: <defaults>
</compile_context>

<pallas_src>
import math
from functools import partial

import jax
import jax.numpy as jnp
from jax.experimental import pallas as pl
from jax.experimental.pallas import tpu as pltpu


# ----------------------------------------------------------------------------- kernel
def data_embedding_kernel(x_ref, w_ref, pe_ref, o_ref, *, tm, pe_rows):
    """One (feature-tile, row-tile) step of  out = x @ W + PE.

    x_ref : (tm, C)        f32  row tile of the flattened (B*l_pad, C) input
    w_ref : (C, td)        f32  feature tile of the conv weight (resident across rows)
    pe_ref: (pe_rows, td)  f32  positional-embedding slab (resident) or matching tile
    o_ref : (tm, td)       f32
    """
    y = jnp.dot(x_ref[...], w_ref[...], preferred_element_type=jnp.float32)
    if pe_rows == tm:
        # PE block rows already match this row tile exactly (pre-tiled / per-tile).
        o_ref[...] = y + pe_ref[...]
    else:
        # PE is resident as the full (l_pad, td) slab; pick this row tile's rows.
        i = pl.program_id(1)
        roff = pl.multiple_of((i % (pe_rows // tm)) * tm, 8)
        o_ref[...] = y + pe_ref[pl.ds(roff, tm), :]


# ------------------------------------------------------------------------- init utils
def make_positional_embedding(d_model: int, max_len: int = 5000) -> jnp.ndarray:
    """Matches PositionalEmbedding.__init__ buffer construction (even d_model)."""
    position = jnp.arange(0, max_len, dtype=jnp.float32)[:, None]
    div_term = jnp.exp(
        jnp.arange(0, d_model, 2, dtype=jnp.float32) * -(math.log(10000.0) / d_model)
    )
    pe = jnp.zeros((max_len, d_model), dtype=jnp.float32)
    pe = pe.at[:, 0::2].set(jnp.sin(position * div_term))
    pe = pe.at[:, 1::2].set(jnp.cos(position * div_term))
    return pe


def make_token_conv_weight(key, c_in: int, d_model: int) -> jnp.ndarray:
    """Kaiming-normal (fan_in, leaky_relu a=0.01) like nn.init.kaiming_normal_.

    PyTorch conv weight is (d_model, c_in, 1); we return the (c_in, d_model)
    matmul form directly (W = torch_weight[:, :, 0].T).
    """
    a = 0.01
    gain = math.sqrt(2.0 / (1.0 + a * a))
    std = gain / math.sqrt(c_in)
    return jax.random.normal(key, (c_in, d_model), dtype=jnp.float32) * std


# --------------------------------------------------------------------------- tiling
_ROW_CAP = 1024          # max rows per tile (also the long-L padding unit divisor)
_LONG_L_TILE = 512       # row tile when a single sequence is longer than _ROW_CAP
_PE_RESIDENT_BYTES = 8 * 1024 * 1024   # keep the full-PE slab resident only if <= 8 MiB


def _round_up(x: int, m: int) -> int:
    return ((x + m - 1) // m) * m


def _pick_feature_tile(d_model: int) -> int:
    if d_model <= 1024:
        return d_model                      # single feature tile; W fetched once
    if d_model % 128 == 0:
        best = 128
        for t in range(128, 1025, 128):
            if d_model % t == 0:
                best = t
        return best
    return d_model  # TODO(synk): odd d_model > 1024 would need masked stores


def _pick_row_tiling(B: int, L: int) -> tuple[int, int, int]:
    """Returns (l_pad, tm, k).  k >= 1 means tm = k*l_pad (tile spans k batch elems);
    k == 0 means tm < l_pad (tm divides l_pad)."""
    if L <= _ROW_CAP:
        l_pad = _round_up(L, 8)
        k = 1
        k_max = max(1, _ROW_CAP // l_pad)
        for cand in range(1, min(B, k_max) + 1):
            # keep >= 2 row tiles when B > 1 so both v7x TensorCores get work
            if B % cand == 0 and (B // cand >= 2 or B == 1):
                k = cand
        return l_pad, k * l_pad, k
    # long sequences: pad L to a multiple of a fixed, pipeline-friendly tile
    tm = _LONG_L_TILE
    l_pad = _round_up(L, tm)
    return l_pad, tm, 0


def _vmem_limit_bytes(tm: int, td: int, c_in: int, pe_rows: int) -> int:
    f32 = 4
    # conservative: 2 pipeline buffers for every operand (incl. resident ones)
    footprint = 2 * f32 * (tm * c_in + c_in * td + pe_rows * td + tm * td)
    return int(min(max(footprint + (8 << 20), 32 << 20), 48 << 20))


# --------------------------------------------------------------------------- wrapper
@jax.jit
def data_embedding(x: jnp.ndarray, w: jnp.ndarray, pe_full: jnp.ndarray) -> jnp.ndarray:
    """x: (B, L, C_in) f32 -> (B, L, d_model) f32.  (x @ W) + pe[:L]; dropout p=0 -> id."""
    B, L, C = x.shape
    D = w.shape[1]

    # Sub-128 feature dims produce masked vst partial stores; XLA's fused einsum+add
    # is already near the HBM roofline there, so skip the Pallas path.
    if D < 128:
        return jnp.einsum("blc,cd->bld", x, w) + pe_full[:L][None, :, :]

    l_pad, tm, k = _pick_row_tiling(B, L)
    td = _pick_feature_tile(D)
    assert pe_full.shape[0] >= l_pad, "PositionalEmbedding max_len too small for this L"

    if l_pad != L:
        # TODO(synk): handle the ragged tail in-kernel (masked store) to avoid this copy.
        x = jnp.pad(x, ((0, 0), (0, l_pad - L), (0, 0)))

    r_pad = B * l_pad
    x2d = x.reshape(r_pad, C)                       # free, contiguous row-major
    pe_l = pe_full[:l_pad, :]                       # (l_pad, D)

    # --- positional-embedding feed: resident, not re-DMA'd per grid step ----------
    if k >= 1:
        # row tile spans k whole batch elements -> identical PE tile everywhere
        pe_arr = pe_l if k == 1 else jnp.tile(pe_l, (k, 1))       # (tm, D)
        pe_block_rows = tm
        pe_index = lambda j, i: (0, j)              # constant over rows -> fetched once
    elif l_pad * td * 4 <= _PE_RESIDENT_BYTES:
        # keep the full (l_pad, td) slab resident and slice inside the kernel
        pe_arr = pe_l
        pe_block_rows = l_pad
        pe_index = lambda j, i: (0, j)
    else:
        # very long sequences: fall back to per-row-tile PE fetch (re-DMA accepted)
        pe_arr = pe_l
        pe_block_rows = tm
        n_l = l_pad // tm
        pe_index = lambda j, i: (i % n_l, j)

    n_i = r_pad // tm                                # row tiles
    n_j = D // td                                    # feature tiles (usually 1)
    grid = (n_j, n_i)                                # rows innermost: W/PE indices are
                                                     # constant along the inner axis

    cost = pl.CostEstimate(
        flops=2 * r_pad * C * D,
        transcendentals=0,
        bytes_accessed=4 * (r_pad * C + C * D + pe_arr.shape[0] * D + r_pad * D),
    )

    kernel = partial(data_embedding_kernel, tm=tm, pe_rows=pe_block_rows)

    out2d = pl.pallas_call(
        kernel,
        out_shape=jax.ShapeDtypeStruct((r_pad, D), jnp.float32),
        grid_spec=pltpu.PrefetchScalarGridSpec(
            num_scalar_prefetch=0,
            grid=grid,
            in_specs=[
                pl.BlockSpec((tm, C), lambda j, i: (i, 0)),            # x rows
                pl.BlockSpec((C, td), lambda j, i: (0, j)),            # W (fetched once/j)
                pl.BlockSpec((pe_block_rows, td), pe_index),           # PE (resident)
            ],
            out_specs=pl.BlockSpec((tm, td), lambda j, i: (i, j)),
        ),
        compiler_params=pltpu.CompilerParams(
            dimension_semantics=("parallel", "parallel"),
            vmem_limit_bytes=_vmem_limit_bytes(tm, td, C, pe_block_rows),
        ),
        cost_estimate=cost,
    )(x2d, w, pe_arr)

    out = out2d.reshape(B, l_pad, D)
    if l_pad != L:
        out = out[:, :L, :]
    return out
    # dropout p=0.0 -> identity; nothing to apply.


# ------------------------------------------------------------------------------ test
if __name__ == "__main__":
    key = jax.random.PRNGKey(0)
    kx1, kw1, kx2, kx3, kw3 = jax.random.split(key, 5)

    # 1) main Pallas path: small shapes, d_model = 128 so stores are lane-dense.
    B, L, C_IN, D_MODEL = 2, 8, 4, 128
    x = jax.random.normal(kx1, (B, L, C_IN), dtype=jnp.float32)
    w = make_token_conv_weight(kw1, C_IN, D_MODEL)
    pe_full = make_positional_embedding(D_MODEL, max_len=5000)

    out = jax.block_until_ready(data_embedding(x, w, pe_full))
    ref = jnp.einsum("blc,cd->bld", x, w) + pe_full[:L][None, :, :]
    assert out.shape == (B, L, D_MODEL)
    assert jnp.allclose(out, ref, atol=1e-5, rtol=1e-5)

    # 2) ragged L (pad + slice path), still through the Pallas kernel.
    L2 = 12
    x2 = jax.random.normal(kx2, (B, L2, C_IN), dtype=jnp.float32)
    out2 = jax.block_until_ready(data_embedding(x2, w, pe_full))
    ref2 = jnp.einsum("blc,cd->bld", x2, w) + pe_full[:L2][None, :, :]
    assert out2.shape == (B, L2, D_MODEL)
    assert jnp.allclose(out2, ref2, atol=1e-5, rtol=1e-5)

    # 3) d_model < 128 takes the XLA-fused fallback (per perf guidance).
    D_SMALL = 32
    x3 = jax.random.normal(kx3, (B, L, C_IN), dtype=jnp.float32)
    w3 = make_token_conv_weight(kw3, C_IN, D_SMALL)
    pe3 = make_positional_embedding(D_SMALL, max_len=5000)
    out3 = jax.block_until_ready(data_embedding(x3, w3, pe3))
    ref3 = jnp.einsum("blc,cd->bld", x3, w3) + pe3[:L][None, :, :]
    assert jnp.allclose(out3, ref3, atol=1e-5, rtol=1e-5)

    print("KERNEL_OK")
</pallas_src>

<mosaic_0001>
module attributes {stable_mosaic.version = 11 : i64} {
  func.func @data_embedding_kernel(%arg0: i32, %arg1: i32, %arg2: memref<8x4xf32, #tpu.memory_space<vmem>>, %arg3: memref<4x128xf32, #tpu.memory_space<vmem>>, %arg4: memref<8x128xf32, #tpu.memory_space<vmem>>, %arg5: memref<8x128xf32, #tpu.memory_space<vmem>>) attributes {dimension_semantics = [#tpu.dimension_semantics<parallel>, #tpu.dimension_semantics<parallel>], iteration_bounds = array<i64: 1, 2>, scalar_prefetch = 0 : i64, scratch_operands = 0 : i64, tpu.core_type = #tpu.core_type<tc>, window_params = [{transform_indices = @transform_0, window_bounds = array<i64: 8, 4>}, {transform_indices = @transform_1, window_bounds = array<i64: 4, 128>}, {transform_indices = @transform_2, window_bounds = array<i64: 8, 128>}, {transform_indices = @transform_3, window_bounds = array<i64: 8, 128>}]} {
    %c0 = arith.constant 0 : index
    %c0_0 = arith.constant 0 : index
    %0 = vector.load %arg2[%c0, %c0_0] : memref<8x4xf32, #tpu.memory_space<vmem>>, vector<8x4xf32>
    %c0_1 = arith.constant 0 : index
    %c0_2 = arith.constant 0 : index
    %1 = vector.load %arg3[%c0_1, %c0_2] : memref<4x128xf32, #tpu.memory_space<vmem>>, vector<4x128xf32>
    %cst = arith.constant dense<0.000000e+00> : vector<8x128xf32>
    %2 = tpu.matmul %0, %1, %cst {dimension_numbers = #tpu.dot_dimension_numbers<[1], [0], [0], [1], [0, 0, 1, 1], [], []>} : vector<8x4xf32>, vector<4x128xf32>, vector<8x128xf32> -> vector<8x128xf32>
    %c0_3 = arith.constant 0 : index
    %c0_4 = arith.constant 0 : index
    %3 = vector.load %arg4[%c0_3, %c0_4] : memref<8x128xf32, #tpu.memory_space<vmem>>, vector<8x128xf32>
    %4 = arith.addf %2, %3 : vector<8x128xf32>
    %c0_5 = arith.constant 0 : index
    %c0_6 = arith.constant 0 : index
    %5 = vector.load %arg5[%c0_5, %c0_6] : memref<8x128xf32, #tpu.memory_space<vmem>>, vector<8x128xf32>
    tpu.vector_store %arg5[%c0_5, %c0_6], %4 {strides = array<i32>} : memref<8x128xf32, #tpu.memory_space<vmem>>, vector<8x128xf32>,
    return
  }
  func.func @transform_0(%arg0: i32, %arg1: i32) -> (i32, i32) {
    %c0_i32 = arith.constant 0 : i32
    %c0_i32_0 = arith.constant 0 : i32
    return %arg1, %c0_i32 : i32, i32
  }
  func.func @transform_1(%arg0: i32, %arg1: i32) -> (i32, i32) {
    %c0_i32 = arith.constant 0 : i32
    %c0_i32_0 = arith.constant 0 : i32
    return %c0_i32, %arg0 : i32, i32
  }
  func.func @transform_2(%arg0: i32, %arg1: i32) -> (i32, i32) {
    %c0_i32 = arith.constant 0 : i32
    %c0_i32_0 = arith.constant 0 : i32
    return %c0_i32, %arg0 : i32, i32
  }
  func.func @transform_3(%arg0: i32, %arg1: i32) -> (i32, i32) {
    %c0_i32 = arith.constant 0 : i32
    return %arg1, %arg0 : i32, i32
  }
}

</mosaic_0001>

<bundles_post_ra>
// kernel: data_embedding.1
= control target key start
LH: loop header
LB: loop body
LE: loop exit
PB: predicated region body
PF: predicated region fallthrough
CT: control target
= control target key end

     0   :  { %8 = vsyncpa [#allocation3], 0  ;;  %s791_s0 = inlined_call_operand.vmem [shape: f32[16,4], index: 0, kind: input, shape index: {}]   ;;  %s792_s1 = inlined_call_operand.hbm [shape: f32[4,128], index: 1, kind: input, shape index: {}]   ;;  %s793_s2 = inlined_call_operand.vmem [shape: f32[8,128], index: 2, kind: input, shape index: {}]   ;;  %s794_s3 = inlined_call_operand.hbm [shape: f32[16,128], index: 3, kind: output, shape index: {}]  }
   0x1   :  { %9 = vsyncpa [#allocation4], 0 }
   0x2   :  { %11 = vsyncpa [#allocation4 + $0x1], 0  ;;  %s638_s12 = smov 0   ;;  %s640_s13 = smov 0  }
   0x3   :  { %s642_s14 = smov 0   ;;  %s644_s15 = smov 0  }
   0x4   :  { %s646_s16 = smov 0   ;;  %s648_s17 = smov 0  }
   0x5 LB: > { %s411_s18 = sadd.s32 4294967295, %s612_s17   ;;  %s412_s19 = sadd.s32 4294967294, %s612_s17   ;;  %s612_s17 = sphi %s648_s17, %s17_s17   ;;  %s608_s16 = sphi %s646_s16, %s812_s16   ;;  %s604_s15 = sphi %s644_s15, %s811_s15   ;;  %s600_s14 = sphi %s642_s14, %s810_s14   ;;  %s596_s13 = sphi %s640_s13, %s809_s13   ;;  %s592_s12 = sphi %s638_s12, %s808_s12  }
   0x6   : > { %s26_s20 = sadd.s32 1, %s608_s16  ;;  %s116_s21 = sadd.s32 1, %s600_s14 }
   0x7   : > { %p27_p0 = scmp.ge.s32.totalorder %s26_s20, 2  ;;  %p126_p1 = scmp.ne.s32.totalorder %s600_s14, %s596_s13 }
   0x8   : > { %p127_p2 = scmp.eq.s32.totalorder %s411_s18, 1  ;;  %p132_p3 = scmp.ne.s32.totalorder %s596_s13, %s592_s12 }
   0x9   : > { %s814_s20 = smov (%p27_p0, %s26_s20), 0  ;;  %p133_p5 = scmp.eq.s32.totalorder %s412_s19, 1 }
   0xa   : > { %p678_p4 = por %p127_p2, %p126_p1  ;;  %s111_s23 = ssub.s32 %s608_s16, %s814_s20 }
   0xb   : > { %p413_p6 = scmp.ge.s32.totalorder %s612_s17, 1  ;;  %p114_p7 = scmp.eq.s32.totalorder %s111_s23, 0 }
   0xc   : > { %s799_s22 = scalar_select %p678_p4, 1, 0 }
   0xd   : > { %p685_p8 = por %p133_p5, %p132_p3  ;;  %p140_p9 = scmp.lt.s32.totalorder %s612_s17, 3 }
   0xe   : > { %s691_s25 = scalar_select %p114_p7, %s600_s14, %s116_s21  }
   0xf   : > { %s800_s24 = scalar_select %p685_p8, 1, 0 }
  0x10   : > { %p693_p10 = pnand %p413_p6, %p140_p9  ;;  %p697_p11 = scmp.eq.s32.totalorder %s411_s18, 0 }
  0x11   : > { %s614_s28 = smov [#allocation2]   ;;  %s502_s6 = scalar_lea.hbm %s792_s1, 64 }
  0x12   : > { %s801_s26 = scalar_select %p693_p10, 1, 0 }
  0x13   : > { %s802_s27 = scalar_select %p697_p11, 1, 0 }
  0x14   : > { %p440_p12 = pneg %p693_p10  ;;  %s155_s29 = sshll.u32 %s614_s28, 4  ;;  %s156_s29 = int_to_ptr.vmem [resolvable:$true] %s155_s29 }
  0x15   : > { %p503_p0 = scmp.ne.s32.totalorder %s792_s1, %s502_s6  ;;  %p509_p5 = scmp.lt.u32.totalorder %s502_s6, %s792_s1 }
  0x16   : > { %p705_p13 = pnand %p697_p11, %p440_p12 }
  0x18   : > { %p504_p1 = pneg %p705_p13 }
  0x1a   : > { %p505_p2 = pnand %p504_p1, %p503_p0 }
  0x1c   : > { %p506_p3 = pneg %p505_p2 }
  0x1e   : > { %p511_p6 = pnand %p509_p5, %p506_p3 }
  0x20   : > { %514 = shalt.err (!%p511_p6)
}
  0x21   : > { %s515_s11 = scalar_lea.vmem %s156_s29, 64  ;;  %p523_p8 = scmp.lt.s32.totalorder %s156_s29, %s156_s29 }
  0x22   : > { %p516_p7 = scmp.ne.s32.totalorder %s156_s29, %s515_s11  ;;  %p524_p4 = scmp.lt.s32.totalorder %s515_s11, %s515_s11 }
  0x24   : > { %p518_p9 = pnand %p516_p7, %p504_p1  ;;  %p525_p11 = por %p524_p4, %p523_p8 }
  0x26   : > { %p519_p12 = pneg %p518_p9 }
  0x28   : > { %p526_p10 = pnand %p525_p11, %p519_p12 }
  0x2a   : > { %529 = shalt.err (!%p526_p10)
}
  0x2b   : > { %443 = dma.hbm_to_vmem [thread:$0]  (!%p705_p13), %s792_s1, 64, %s156_s29, [#allocation3]  }
  0x2c   : > { %p804_p0 = scmp.ne.s32.totalorder %s801_s26, 0 }
  0x2d   : > { %p805_p2 = scmp.ne.s32.totalorder (!%p804_p0), %s802_s27, 0 }
  0x2e   : > { %182 = sbr.rel (%p804_p0) target bundleno = 289 (0x121), region = 32 }
  0x35   : > { %583 = dma.done.wait (%p805_p2), [#allocation3], 64  }
  0x36   : > { %585 = vsyncadd (%p805_p2), [#allocation3], 4294967232  ;;  %p209_p4 = scmp.lt.s32.totalorder %s604_s15, 1  ;;  %v615_v0 = vmov 0.0   ;;  %vm616_vm0 = vmmov 0   ;;  %vm224_vm1 = vcmask 1043456  }
  0x37   : > { %429 = vmatprep.subr.mxu0 %v615_v0  ;;  %431 = vmatprep.mubr.msk.f32.mxu0 %vm616_vm0, %v615_v0  ;;  %vm220_vm2 = vcmask 31744   ;;  %v218_v1 = vld [vmem:[#allocation2] sm:$0xf]  ;;  %s206_s27 = sand.u32 1, %s596_s13   ;;  %s424_s6 = sshll.u32 %s604_s15, 7 }
  0x38   : > { %s210_s21 = scalar_select %p209_p4, %s604_s15, 1  ;;  %430 = vmatpush3.msk.msra.mxu0 %vm224_vm1, %v218_v1  ;;  %v219_v3 = vld [vmem:[%s793_s2] sm:$0xff] }
  0x39   : > { %s419_s30 = sshll.u32 %s206_s27, 3  ;;  %s744_s11 = scalar_lea.hbm %s794_s3, %s424_s6 }
  0x3a   : > { %s420_s23 = sshll.u32 %s210_s21, 3  ;;  %s208_s7 = scalar_lea.vmem [#allocation5], %s419_s30 }
  0x3b   : > { %s212_s29 = scalar_lea.vmem %s791_s0, %s420_s23  ;;  %s314_s8 = sshll.u32 %s208_s7, 4  ;;  %s746_s8 = int_to_ptr.vmem [resolvable:$true] %s314_s8 }
  0x3c   : > { %v217_v2 = vld [vmem:[%s212_s29] sm:$0xff]  ;;  %s300_s18 = scalar_lea.sflag [#allocation4], %s206_s27  ;;  %s530_s19 = scalar_lea.vmem %s746_s8, 128 }
  0x3d   : > { %432 = vmatmul.mubr.msk.f32.vlgmr.msra.gmra.mrb[0].mxu0 %vm220_vm2, %v217_v2  ;;  %p531_p8 = scmp.ne.s32.totalorder %s746_s8, %s530_s19  ;;  %p806_p10 = scmp.ne.s32.totalorder %s799_s22, 0 }
  0x3e   : > { %s617_s15 = smov [#allocation5]  }
  0x3f   : > { %p532_p11 = pnand %p531_p8, %p806_p10  ;;  %s534_s21 = sshll.u32 %s617_s15, 4  ;;  %s535_s21 = int_to_ptr.vmem [resolvable:$false] %s534_s21 }
  0x40   : > { %s536_s23 = scalar_lea.vmem %s535_s21, 256  ;;  %p537_p1 = scmp.lt.s32.totalorder %s746_s8, %s535_s21 }
  0x41   : > { %p533_p13 = pneg %p532_p11  ;;  %p538_p3 = scmp.lt.s32.totalorder %s536_s23, %s530_s19 }
  0x43   : > { %p539_p5 = por %p538_p3, %p537_p1 }
  0x45   : > { %p540_p6 = pnand %p539_p5, %p533_p13 }
 0x110   : > { %v294_v4 = vpop.f32.mrb[0].mxu0 }
 0x111   : > { %v295_v5 = vadd.f32 %v294_v4, %v219_v3  ;;  %v433_v6 = vpop.f32.mrb[1].mxu0 }
 0x113   : > { %298 = vst [vmem:[%s208_s7] sm:$0xff] %v295_v5 }
 0x114   : > { %543 = shalt.err (!%p540_p6)
}
 0x115   : > { %s544_s26 = scalar_lea.hbm %s744_s11, 128  ;;  %s548_s27 = scalar_lea.hbm %s794_s3, 256 }
 0x116   : > { %p545_p7 = scmp.ne.s32.totalorder %s744_s11, %s544_s26  ;;  %p549_p0 = scmp.lt.u32.totalorder %s744_s11, %s794_s3 }
 0x117   : > { %p550_p2 = scmp.lt.u32.totalorder %s548_s27, %s544_s26  ;;  %p552_p8 = scmp.lt.u32.totalorder %s544_s26, %s744_s11 }
 0x118   : > { %p546_p9 = pnand %p545_p7, %p806_p10 }
 0x119   : > { %p551_p4 = por %p550_p2, %p549_p0 }
 0x11a   : > { %p547_p12 = pneg %p546_p9 }
 0x11b   : > { %p553_p11 = por %p552_p8, %p551_p4 }
 0x11d   : > { %p554_p13 = pnand %p553_p11, %p547_p12 }
 0x11f   : > { %557 = shalt.err (!%p554_p13)
}
 0x120   : > { %438 = dma.vmem_to_hbm [thread:$0]  (%p806_p10), %s746_s8, 128, %s744_s11, %s300_s18  }
 0x121 PF: > { %p450_p1 = scmp.ge.s32.totalorder %s612_s17, 2  ;;  %s326_s5 = sand.u32 1, %s592_s12  }
 0x122   : > { %p807_p3 = scmp.ne.s32.totalorder %s800_s24, 0  ;;  %s327_s6 = scalar_lea.sflag [#allocation4], %s326_s5 }
 0x124   : > { %p445_p5 = pnand %p450_p1, %p807_p3 }
 0x126   : > { %587 = dma.done.wait (!%p445_p5), %s327_s6, 128  }
 0x127   : > { %589 = vsyncadd (!%p445_p5), %s327_s6, 4294967168  ;;  %s17_s17 = sadd.s32 1, %s612_s17   ;;  %s808_s12 = smov %s596_s13 }
 0x128   : > { %p14_p6 = scmp.ge.s32.totalorder %s17_s17, 4   ;;  %s809_s13 = smov %s600_s14 }
 0x129   : > { %s810_s14 = smov %s691_s25  ;;  %s811_s15 = smov %s608_s16 }
 0x12a   : > { %s812_s16 = smov %s814_s20  ;;  %16 = sbr.rel (!%p14_p6) target bundleno = 5 (0x5), region = 76 }
 0x131   :  { %332 = vsyncpa [#allocation3], 1 }
 0x132   :  { %334 = vsyncpa [#allocation3 + $0x1], 1 }
 0x133   :  { %335 = vsyncpa [#allocation4], 1 }
 0x134   :  { %337 = vsyncpa [#allocation4 + $0x1], 1 }

</bundles_post_ra>
